<compile_context>
chip_gen: v7x
topology: tpu7x:2x2x1
jax: 0.10.0
libtpu: 0.0.40
codegen_flags: <defaults>
</compile_context>

<pallas_src>
import jax
import jax.numpy as jnp
from jax import lax
from jax.experimental import pallas as pl
from jax.experimental.pallas import tpu as pltpu


def _round_up(a, b):
    return (a + b - 1) // b * b


def _cdiv(a, b):
    return -(-a // b)


def _make_conv1d_kernel(K, dilation, L_tile):
    """One fused-matmul conv tile: out = W_stack @ im2col(x_tile) + bias."""

    def kernel(x_ref, xh_ref, w_ref, b_ref, o_ref):
        # x_ref : (1, C_in_p, L_tile)     bf16  current length tile
        # xh_ref: (1, C_in_p, halo_blk)   bf16  right halo (start of next tile)
        # w_ref : (C_out, K*C_in_p)       bf16  im2col-stacked weights
        # b_ref : (C_out, 1)              f32
        # o_ref : (1, C_out, L_tile)      f32 (or x dtype)
        x_cur = x_ref[0]
        if K == 1:
            x_im2col = x_cur
        else:
            # One concat per tile; static lane-offset slices for each tap.
            x_full = jnp.concatenate([x_cur, xh_ref[0]], axis=-1)
            taps = [x_full[:, k * dilation: k * dilation + L_tile]
                    for k in range(K)]
            x_im2col = jnp.concatenate(taps, axis=0)        # (K*C_in_p, L_tile)

        acc = jnp.dot(w_ref[...], x_im2col,
                      preferred_element_type=jnp.float32)   # (C_out, L_tile) f32
        o_ref[0] = (acc + b_ref[...]).astype(o_ref.dtype)

    return kernel


def same_shape_conv(x, weight, bias, *, dilation=1, l_tile=512):
    """Forward pass of SameShapeConv.

    x:      (N, C_in, L)      float32
    weight: (C_out, C_in, K)  float32 (PyTorch Conv1d layout)
    bias:   (C_out,)          float32
    """
    N, C_in, L = x.shape
    C_out, _, K = weight.shape
    rf = (K - 1) * dilation + 1
    padding = rf // 2
    L_out = L + 2 * padding - (rf - 1)   # == L if rf odd, L+1 if rf even
    halo = rf - 1
    out_dtype = x.dtype

    # ---- tiling choices (lane-dense, halo-block-aligned) --------------------
    C_in_p = _round_up(C_in, 8)                         # sublane-aligned channels
    L_tile = min(_round_up(l_tile, 128), _round_up(L_out, 128))
    halo_blk = _round_up(max(halo, 1), 128)             # narrow halo fetch
    if L_tile % halo_blk:
        L_tile = _round_up(L_tile, halo_blk)
    nL = _cdiv(L_out, L_tile)
    L_out_p = nL * L_tile                               # lane-dense output length
    L_x_total = L_out_p + halo_blk                      # padded input length

    # ---- operand prep (bf16 downcast fused with padding: one pass over x) ---
    x_p = jnp.pad(
        x.astype(jnp.bfloat16),
        ((0, 0), (0, C_in_p - C_in), (padding, L_x_total - L - padding)))

    w_p = jnp.pad(weight, ((0, 0), (0, C_in_p - C_in), (0, 0)))  # (C_out, C_in_p, K)
    # (C_out, K, C_in_p) -> (C_out, K*C_in_p): column block k holds W[:, :, k].
    w_stack = jnp.transpose(w_p, (0, 2, 1)).reshape(C_out, K * C_in_p)
    w_stack = w_stack.astype(jnp.bfloat16)
    b_2d = bias.astype(jnp.float32).reshape(C_out, 1)

    ratio = L_tile // halo_blk
    kernel = _make_conv1d_kernel(K, dilation, L_tile)

    out = pl.pallas_call(
        kernel,
        out_shape=jax.ShapeDtypeStruct((N, C_out, L_out_p), out_dtype),
        grid_spec=pltpu.PrefetchScalarGridSpec(
            num_scalar_prefetch=0,
            grid=(N, nL),
            in_specs=[
                # current length tile of x
                pl.BlockSpec((1, C_in_p, L_tile), lambda b, l: (b, 0, l)),
                # right halo: first halo_blk columns after this tile
                pl.BlockSpec((1, C_in_p, halo_blk),
                             lambda b, l: (b, 0, (l + 1) * ratio)),
                # im2col-stacked weights (grid-invariant)
                pl.BlockSpec((C_out, K * C_in_p), lambda b, l: (0, 0)),
                # bias
                pl.BlockSpec((C_out, 1), lambda b, l: (0, 0)),
            ],
            out_specs=pl.BlockSpec((1, C_out, L_tile), lambda b, l: (b, 0, l)),
        ),
        compiler_params=pltpu.CompilerParams(
            dimension_semantics=("parallel", "parallel"),
            # Explicit VMEM budget; blocks above are tiny for these shapes.
            # Re-derive L_tile/C tiles for v7x's 64 MiB physical VMEM if scaled up.
            vmem_limit_bytes=32 * 1024 * 1024),
    )(x_p, x_p, w_stack, b_2d)

    if L_out_p != L_out:
        out = out[:, :, :L_out]
    # Faithful to the PyTorch module: when the receptive field is even it
    # returns out[:, :-1], which drops the LAST OUTPUT CHANNEL (dim 1).
    if rf % 2 == 0:
        out = out[:, :-1]
    return out


def _reference(x, weight, bias, *, dilation=1):
    C_out, _, K = weight.shape
    rf = (K - 1) * dilation + 1
    padding = rf // 2
    out = lax.conv_general_dilated(
        x, weight,
        window_strides=(1,),
        padding=[(padding, padding)],
        rhs_dilation=(dilation,),
        dimension_numbers=("NCH", "OIH", "NCH"),
        precision=lax.Precision.HIGHEST,
    ) + bias[None, :, None]
    if rf % 2 == 0:
        out = out[:, :-1]
    return out


if __name__ == "__main__":
    key = jax.random.PRNGKey(0)

    # Case 1: odd receptive field (kernel_size=3, dilation=2 -> rf=5, length preserved).
    N, C_in, C_out, L, K, dil = 2, 4, 6, 16, 3, 2
    k1, k2, k3, key = jax.random.split(key, 4)
    bound = 1.0 / jnp.sqrt(C_in * K)
    x = jax.random.normal(k1, (N, C_in, L), dtype=jnp.float32)
    w = jax.random.uniform(k2, (C_out, C_in, K), minval=-bound, maxval=bound,
                           dtype=jnp.float32)
    b = jax.random.uniform(k3, (C_out,), minval=-bound, maxval=bound,
                           dtype=jnp.float32)

    out = same_shape_conv(x, w, b, dilation=dil)
    jax.block_until_ready(out)
    assert out.shape == (N, C_out, L), out.shape
    # Tight check: reference fed the same bf16-rounded inputs the kernel uses.
    x_bf = x.astype(jnp.bfloat16).astype(jnp.float32)
    w_bf = w.astype(jnp.bfloat16).astype(jnp.float32)
    ref_bf = _reference(x_bf, w_bf, b, dilation=dil)
    assert jnp.allclose(out, ref_bf, atol=1e-4, rtol=1e-4)
    # Loose check vs full-f32 reference (bf16 MXU inputs -> ~1e-2 rel budget).
    ref = _reference(x, w, b, dilation=dil)
    assert jnp.allclose(out, ref, atol=5e-2, rtol=5e-2)

    # Case 2: even receptive field (kernel_size=2, dilation=1 -> rf=2,
    # module returns out[:, :-1], dropping the last output channel).
    K2, dil2 = 2, 1
    k4, k5, key = jax.random.split(key, 3)
    bound2 = 1.0 / jnp.sqrt(C_in * K2)
    w2 = jax.random.uniform(k4, (C_out, C_in, K2), minval=-bound2, maxval=bound2,
                            dtype=jnp.float32)
    b2 = jax.random.uniform(k5, (C_out,), minval=-bound2, maxval=bound2,
                            dtype=jnp.float32)

    out2 = same_shape_conv(x, w2, b2, dilation=dil2)
    jax.block_until_ready(out2)
    assert out2.shape == (N, C_out - 1, L + 1), out2.shape
    w2_bf = w2.astype(jnp.bfloat16).astype(jnp.float32)
    ref2_bf = _reference(x_bf, w2_bf, b2, dilation=dil2)
    assert jnp.allclose(out2, ref2_bf, atol=1e-4, rtol=1e-4)
    ref2 = _reference(x, w2, b2, dilation=dil2)
    assert jnp.allclose(out2, ref2, atol=5e-2, rtol=5e-2)

    print("KERNEL_OK")
</pallas_src>

<mosaic_0001>
module attributes {stable_mosaic.version = 11 : i64} {
  func.func @kernel(%arg0: i32, %arg1: i32, %arg2: memref<1x8x128xbf16, #tpu.memory_space<vmem>>, %arg3: memref<1x8x128xbf16, #tpu.memory_space<vmem>>, %arg4: memref<6x24xbf16, #tpu.memory_space<vmem>>, %arg5: memref<6x1xf32, #tpu.memory_space<vmem>>, %arg6: memref<1x6x128xf32, #tpu.memory_space<vmem>>) attributes {dimension_semantics = [#tpu.dimension_semantics<parallel>, #tpu.dimension_semantics<parallel>], iteration_bounds = array<i64: 2, 1>, scalar_prefetch = 0 : i64, scratch_operands = 0 : i64, tpu.core_type = #tpu.core_type<tc>, window_params = [{transform_indices = @transform_0, window_bounds = array<i64: 1, 8, 128>}, {transform_indices = @transform_1, window_bounds = array<i64: 1, 8, 128>}, {pipeline_mode = #tpu.pipeline_mode<synchronous>, transform_indices = @transform_2, window_bounds = array<i64: 6, 24>}, {pipeline_mode = #tpu.pipeline_mode<synchronous>, transform_indices = @transform_3, window_bounds = array<i64: 6, 1>}, {transform_indices = @transform_4, window_bounds = array<i64: 1, 6, 128>}]} {
    %c0 = arith.constant 0 : index
    %c0_0 = arith.constant 0 : index
    %c0_1 = arith.constant 0 : index
    %0 = vector.load %arg2[%c0, %c0_0, %c0_1] : memref<1x8x128xbf16, #tpu.memory_space<vmem>>, vector<1x8x128xbf16>
    %1 = vector.shape_cast %0 : vector<1x8x128xbf16> to vector<8x128xbf16>
    %c0_2 = arith.constant 0 : index
    %c0_3 = arith.constant 0 : index
    %c0_4 = arith.constant 0 : index
    %2 = vector.load %arg3[%c0_2, %c0_3, %c0_4] : memref<1x8x128xbf16, #tpu.memory_space<vmem>>, vector<1x8x128xbf16>
    %3 = vector.shape_cast %2 : vector<1x8x128xbf16> to vector<8x128xbf16>
    %4 = tpu.concatenate %1, %3 in 1 : vector<8x128xbf16>, vector<8x128xbf16> -> vector<8x256xbf16>
    %5 = vector.extract_strided_slice %4 {offsets = [0, 0], sizes = [8, 128], strides = [1, 1]} : vector<8x256xbf16> to vector<8x128xbf16>
    %6 = vector.extract_strided_slice %4 {offsets = [0, 2], sizes = [8, 128], strides = [1, 1]} : vector<8x256xbf16> to vector<8x128xbf16>
    %7 = vector.extract_strided_slice %4 {offsets = [0, 4], sizes = [8, 128], strides = [1, 1]} : vector<8x256xbf16> to vector<8x128xbf16>
    %8 = tpu.concatenate %5, %6, %7 in 0 : vector<8x128xbf16>, vector<8x128xbf16>, vector<8x128xbf16> -> vector<24x128xbf16>
    %c0_5 = arith.constant 0 : index
    %c0_6 = arith.constant 0 : index
    %9 = vector.load %arg4[%c0_5, %c0_6] : memref<6x24xbf16, #tpu.memory_space<vmem>>, vector<6x24xbf16>
    %cst = arith.constant dense<0.000000e+00> : vector<6x128xf32>
    %10 = tpu.matmul %9, %8, %cst {dimension_numbers = #tpu.dot_dimension_numbers<[1], [0], [0], [1], [0, 0, 1, 1], [], []>} : vector<6x24xbf16>, vector<24x128xbf16>, vector<6x128xf32> -> vector<6x128xf32>
    %c0_7 = arith.constant 0 : index
    %c0_8 = arith.constant 0 : index
    %11 = vector.load %arg5[%c0_7, %c0_8] : memref<6x1xf32, #tpu.memory_space<vmem>>, vector<6x1xf32>
    %12 = vector.broadcast %11 : vector<6x1xf32> to vector<6x128xf32>
    %13 = arith.addf %10, %12 : vector<6x128xf32>
    %c0_9 = arith.constant 0 : index
    %c0_10 = arith.constant 0 : index
    %c0_11 = arith.constant 0 : index
    %14 = vector.load %arg6[%c0_9, %c0_10, %c0_11] : memref<1x6x128xf32, #tpu.memory_space<vmem>>, vector<1x6x128xf32>
    %15 = vector.shape_cast %14 : vector<1x6x128xf32> to vector<6x128xf32>
    %16 = vector.shape_cast %13 : vector<6x128xf32> to vector<1x6x128xf32>
    tpu.vector_store %arg6[%c0_9, %c0_10, %c0_11], %16 {strides = array<i32>} : memref<1x6x128xf32, #tpu.memory_space<vmem>>, vector<1x6x128xf32>,
    return
  }
  func.func @transform_0(%arg0: i32, %arg1: i32) -> (i32, i32, i32) {
    %c0_i32 = arith.constant 0 : i32
    %c0_i32_0 = arith.constant 0 : i32
    return %arg0, %c0_i32, %arg1 : i32, i32, i32
  }
  func.func @transform_1(%arg0: i32, %arg1: i32) -> (i32, i32, i32) {
    %c1_i32 = arith.constant 1 : i32
    %0 = arith.addi %arg1, %c1_i32 : i32
    %c1_i32_0 = arith.constant 1 : i32
    %1 = arith.muli %0, %c1_i32_0 : i32
    %c0_i32 = arith.constant 0 : i32
    %c0_i32_1 = arith.constant 0 : i32
    return %arg0, %c0_i32, %1 : i32, i32, i32
  }
  func.func @transform_2(%arg0: i32, %arg1: i32) -> (i32, i32) {
    %c0_i32 = arith.constant 0 : i32
    %c0_i32_0 = arith.constant 0 : i32
    %c0_i32_1 = arith.constant 0 : i32
    return %c0_i32, %c0_i32_0 : i32, i32
  }
  func.func @transform_3(%arg0: i32, %arg1: i32) -> (i32, i32) {
    %c0_i32 = arith.constant 0 : i32
    %c0_i32_0 = arith.constant 0 : i32
    %c0_i32_1 = arith.constant 0 : i32
    return %c0_i32, %c0_i32_0 : i32, i32
  }
  func.func @transform_4(%arg0: i32, %arg1: i32) -> (i32, i32, i32) {
    %c0_i32 = arith.constant 0 : i32
    %c0_i32_0 = arith.constant 0 : i32
    return %arg0, %c0_i32, %arg1 : i32, i32, i32
  }
}

</mosaic_0001>

<bundles_post_ra>
// kernel: tpu_custom_call.1
= control target key start
LH: loop header
LB: loop body
LE: loop exit
PB: predicated region body
PF: predicated region fallthrough
CT: control target
= control target key end

     0   :  { %9 = vsyncpa [#allocation3], 0  ;;  %s894_s0 = inlined_call_operand.hbm [shape: bf16[2,8,256], index: 0, kind: input, shape index: {}]   ;;  %s895_s1 = inlined_call_operand.hbm [shape: bf16[2,8,256], index: 1, kind: input, shape index: {}]   ;;  %s896_s2 = inlined_call_operand.vmem [shape: bf16[6,24], index: 2, kind: input, shape index: {}]   ;;  %s897_s3 = inlined_call_operand.vmem [shape: f32[6,1], index: 3, kind: input, shape index: {}]   ;;  %s898_s4 = inlined_call_operand.vmem [shape: f32[2,6,128], index: 4, kind: output, shape index: {}]  }
   0x1   :  { %11 = vsyncpa [#allocation3 + $0x1], 0 }
   0x2   :  { %12 = vsyncpa [#allocation5], 0 }
   0x3   :  { %14 = vsyncpa [#allocation5 + $0x1], 0  ;;  %s717_s15 = smov 0   ;;  %s719_s16 = smov 0  }
   0x4   :  { %s721_s17 = smov 0   ;;  %s723_s18 = smov 0  }
   0x5   :  { %s725_s19 = smov 0   ;;  %s727_s20 = smov 0  }
   0x6 LB: > { %s472_s21 = sadd.s32 4294967295, %s683_s20   ;;  %s32_s22 = sadd.s32 1, %s679_s19  ;;  %s683_s20 = sphi %s727_s20, %s20_s20   ;;  %s679_s19 = sphi %s725_s19, %s912_s19   ;;  %s675_s18 = sphi %s723_s18, %s911_s18   ;;  %s671_s17 = sphi %s721_s17, %s910_s17   ;;  %s667_s16 = sphi %s719_s16, %s909_s16   ;;  %s663_s15 = sphi %s717_s15, %s908_s15  }
   0x7   : > { %p34_p0 = scmp.ge.s32.totalorder %s32_s22, 2  ;;  %s41_s23 = sadd.s32 1, %s671_s17 }
   0x8   : > { %p48_p1 = scmp.ne.s32.totalorder %s671_s17, %s667_s16  ;;  %p49_p2 = scmp.eq.s32.totalorder %s683_s20, 0 }
   0x9   : > { %s914_s22 = smov (%p34_p0, %s32_s22), 0  ;;  %p54_p4 = scmp.ne.s32.totalorder %s667_s16, %s663_s15 }
   0xa   : > { %p753_p3 = por %p49_p2, %p48_p1  ;;  %s36_s25 = ssub.s32 %s679_s19, %s914_s22 }
   0xb   : > { %p55_p5 = scmp.eq.s32.totalorder %s472_s21, 0  ;;  %p39_p6 = scmp.eq.s32.totalorder %s36_s25, 0 }
   0xc   : > { %p513_p8 = scmp.lt.s32.totalorder %s683_s20, 2  ;;  %s769_s28 = sand.u32 1, %s671_s17  }
   0xd   : > { %p760_p7 = por %p55_p5, %p54_p4  ;;  %s489_s29 = sshll.u32 %s679_s19, 7 }
   0xe   : > { %s766_s27 = scalar_select %p39_p6, %s671_s17, %s41_s23  }
   0xf   : > { %s901_s26 = scalar_select %p760_p7, 1, 0 }
  0x10   : > { %s476_s30 = sshll.u32 %s769_s28, 2  ;;  %s778_s7 = scalar_lea.hbm %s894_s0, %s489_s29 }
  0x11   : > { %s188_s8 = scalar_lea.vmem [#allocation2], %s476_s30  ;;  %p784_p9 = pnand %p513_p8, %p753_p3 }
  0x12   : > { %s197_s9 = sshll.u32 %s188_s8, 4  ;;  %s185_s11 = scalar_lea.sflag [#allocation3], %s769_s28  ;;  %s788_s9 = int_to_ptr.vmem [resolvable:$true] %s197_s9 }
  0x13   : > { %s568_s12 = scalar_lea.hbm %s778_s7, 64  ;;  %p570_p13 = pneg %p784_p9 }
  0x14   : > { %p569_p12 = scmp.ne.s32.totalorder %s778_s7, %s568_s12  ;;  %s573_s15 = scalar_lea.hbm %s894_s0, 256 }
  0x15   : > { %p574_p2 = scmp.lt.u32.totalorder %s778_s7, %s894_s0  ;;  %p575_p3 = scmp.lt.u32.totalorder %s573_s15, %s568_s12 }
  0x16   : > { %p571_p0 = pnand %p570_p13, %p569_p12  ;;  %p577_p5 = scmp.lt.u32.totalorder %s568_s12, %s778_s7 }
  0x17   : > { %p576_p4 = por %p575_p3, %p574_p2 }
  0x18   : > { %p572_p1 = pneg %p571_p0 }
  0x19   : > { %p578_p6 = por %p577_p5, %p576_p4 }
  0x1b   : > { %p579_p8 = pnand %p578_p6, %p572_p1 }
  0x1d   : > { %582 = shalt.err (!%p579_p8)
}
  0x1e   : > { %s583_s24 = scalar_lea.vmem %s788_s9, 64  ;;  %s685_s25 = smov [#allocation2]  }
  0x1f   : > { %p584_p12 = scmp.ne.s32.totalorder %s788_s9, %s583_s24  ;;  %s588_s5 = sshll.u32 %s685_s25, 4  ;;  %s589_s5 = int_to_ptr.vmem [resolvable:$false] %s588_s5 }
  0x20   : > { %s590_s6 = scalar_lea.vmem %s589_s5, 128  ;;  %p591_p11 = scmp.lt.s32.totalorder %s788_s9, %s589_s5 }
  0x21   : > { %p586_p0 = pnand %p584_p12, %p570_p13  ;;  %p592_p2 = scmp.lt.s32.totalorder %s590_s6, %s583_s24 }
  0x23   : > { %p587_p10 = pneg %p586_p0  ;;  %p593_p3 = por %p592_p2, %p591_p11 }
  0x25   : > { %p594_p4 = pnand %p593_p3, %p587_p10 }
  0x27   : > { %597 = shalt.err (!%p594_p4)
}
  0x28   : > { %509 = dma.hbm_to_vmem [thread:$0]  (!%p784_p9), %s778_s7, 64, %s788_s9, %s185_s11  }
  0x29   : > { %p903_p1 = scmp.lt.s32.totalorder %s683_s20, 3  ;;  %p904_p5 = scmp.ge.s32.totalorder %s683_s20, 1 }
  0x2a   : > { %s405_s14 = scalar_lea.hbm %s895_s1, %s489_s29  ;;  %s208_s21 = scalar_lea.vmem [#allocation4], %s476_s30 }
  0x2b   : > { %p822_p6 = pnand %p904_p5, %p903_p1  ;;  %s831_s15 = scalar_lea.hbm %s405_s14, 64 }
  0x2c   : > { %s218_s23 = sshll.u32 %s208_s21, 4  ;;  %s205_s7 = scalar_lea.sflag [#allocation5], %s769_s28  ;;  %s219_s23 = int_to_ptr.vmem [resolvable:$true] %s218_s23 }
  0x2d   : > { %s905_s8 = scalar_select %p822_p6, 1, 0 }
  0x2e   : > { %s628_s9 = scalar_lea.hbm %s405_s14, 128  ;;  %s603_s29 = scalar_lea.hbm %s895_s1, 256 }
  0x2f   : > { %p599_p10 = scmp.ne.s32.totalorder %s831_s15, %s628_s9  ;;  %p604_p12 = scmp.lt.u32.totalorder %s831_s15, %s895_s1 }
  0x30   : > { %p605_p0 = scmp.lt.u32.totalorder %s603_s29, %s628_s9  ;;  %p607_p3 = scmp.lt.u32.totalorder %s628_s9, %s831_s15 }
  0x31   : > { %p601_p11 = pnand %p599_p10, %p570_p13 }
  0x32   : > { %p606_p2 = por %p605_p0, %p604_p12 }
  0x33   : > { %p602_p8 = pneg %p601_p11 }
  0x34   : > { %p608_p4 = por %p607_p3, %p606_p2 }
  0x36   : > { %p609_p1 = pnand %p608_p4, %p602_p8 }
  0x38   : > { %612 = shalt.err (!%p609_p1)
}
  0x39   : > { %s613_s28 = scalar_lea.vmem %s219_s23, 64  ;;  %s686_s30 = smov [#allocation4]  }
  0x3a   : > { %p614_p5 = scmp.ne.s32.totalorder %s219_s23, %s613_s28  ;;  %s618_s6 = sshll.u32 %s686_s30, 4  ;;  %s619_s6 = int_to_ptr.vmem [resolvable:$false] %s618_s6 }
  0x3b   : > { %s620_s12 = scalar_lea.vmem %s619_s6, 128  ;;  %p621_p7 = scmp.lt.s32.totalorder %s219_s23, %s619_s6 }
  0x3c   : > { %p616_p10 = pnand %p614_p5, %p570_p13  ;;  %p622_p6 = scmp.lt.s32.totalorder %s620_s12, %s613_s28 }
  0x3e   : > { %p617_p11 = pneg %p616_p10  ;;  %p623_p0 = por %p622_p6, %p621_p7 }
  0x40   : > { %p624_p12 = pnand %p623_p0, %p617_p11 }
  0x42   : > { %627 = shalt.err (!%p624_p12)
}
  0x43   : > { %512 = dma.hbm_to_vmem [thread:$0]  (!%p784_p9), %s831_s15, 64, %s219_s23, %s205_s7  }
  0x44   : > { %p906_p8 = scmp.ne.s32.totalorder %s905_s8, 0 }
  0x45   : > { %s229_s13 = sand.u32 (!%p906_p8), 1, %s667_s16   ;;  %p907_p13 = scmp.ne.s32.totalorder (!%p906_p8), %s901_s26, 0 }
  0x46   : > { %227 = sbr.rel (%p906_p8) target bundleno = 426 (0x1aa), region = 36  ;;  %s483_s14 = sshll.u32 (!%p906_p8), %s229_s13, 2 }
  0x47   : > { %s230_s21 = scalar_lea.sflag (!%p906_p8), [#allocation3], %s229_s13  ;;  %s233_s9 = scalar_lea.vmem (!%p906_p8), [#allocation2], %s483_s14 }
  0x4d   : > { %654 = dma.done.wait (%p907_p13), %s230_s21, 64  }
  0x4e   : > { %656 = vsyncadd (%p907_p13), %s230_s21, 4294967232  ;;  %s239_s11 = scalar_lea.sflag [#allocation5], %s229_s13  ;;  %s242_s24 = scalar_lea.vmem [#allocation4], %s483_s14 }
  0x4f   : > { %658 = dma.done.wait (%p907_p13), %s239_s11, 64  }
  0x50   : > { %660 = vsyncadd (%p907_p13), %s239_s11, 4294967232  ;;  %v687_v0 = vmov 0.0   ;;  %v283_v1 = vld [vmem:[%s233_s9] sm:$0xf]  ;;  %v284_v2 = vld [vmem:[%s242_s24] sm:$0xf] }
  0x51   : > { %494 = vmatprep.subr.bf16.mxu0 %v687_v0  ;;  %s688_s10 = smov 124   ;;  %v287_v3 = vrot.slane %v283_v1, 4  ;;  %vm689_vm0 = vmmov 0   ;;  %s690_s8 = smov 126   ;;  %v288_v4 = vrot.slane %v284_v2, 4  ;;  %v691_v5 = vmov 0  }
  0x52   : > { %295 = vrot.lane.b32.xlu1 %v283_v1, %s688_s10  ;;  %498 = vmatprep.mubr.msk.bf16.mxu0 %vm689_vm0, %v687_v0  ;;  %v307_v6 = vld [vmem:[%s897_s3] sm:$0x3f]  ;;  %vm293_vm1 = vcmask 1031168   ;;  %vm301_vm2 = vcmask 1043456   ;;  %vm299_vm3 = vcmask 1014784   ;;  %vm313_vm4 = vcmask 195584  }
  0x53   : > { %289 = vrot.lane.b32.xlu0 %v287_v3, %s690_s8  ;;  %v306_v15 = vld [vmem:[%s896_s2] sm:$0x7]  ;;  %p275_p7 = scmp.lt.s32.totalorder %s675_s18, 1 }
  0x54   : > { %567 = vset.pattern.permute.xlu0 %v691_v5 }
  0x55   : > { %s916_s18 = smov (!%p275_p7, %s675_s18), 1 }
  0x56   : > { %297 = vrot.lane.b32.xlu1 %v284_v2, %s688_s10  ;;  %s485_s29 = sshll.u32 %s916_s18, 3 }
  0x57   : > { %291 = vrot.lane.b32.xlu0 %v288_v4, %s690_s8  ;;  %s281_s28 = scalar_lea.vmem %s898_s4, %s485_s29 }
  0x5b   : > { %310 = vperm.xlu0 %567, %v307_v6  }
  0xc4   : > { %v296_v7 = vpop.permute.xlu1 %295 }
  0xc5   : > { %v290_v8 = vpop.permute.xlu0 %289 }
  0xc8   : > { %v298_v9 = vpop.permute.xlu1 %297 }
  0xc9   : > { %v292_v10 = vpop.permute.xlu0 %291  ;;  %v300_v13 = vsel %vm299_vm3, %v296_v7, %v298_v9 }
  0xca   : > { %v294_v11 = vsel %vm293_vm1, %v290_v8, %v292_v10  ;;  %v318_v14 = vsel %vm301_vm2, %v300_v13, 0 }
  0xcb   : > { %v304_v12 = vsel %vm301_vm2, %v283_v1, %v294_v11 }
  0xcc   : > { %495 = vmatpush3.bf16.msra.mxu0 %v304_v12 }
  0xcd   : > { %496 = vmatprep.subr.bf16.mxu0 %v687_v0 }
  0xd0   : > { %497 = vmatpush3.bf16.msra.mxu0 %v318_v14 }
  0xd3   : > { %499 = vmatmul.mubr.msk.bf16.vlgmr.msra.gmra.mrb[0].mxu0 %vm313_vm4, %v306_v15 }
  0xda   : > { %v311_v16 = vpop.permute.xlu0 %310 }
 0x1a6   : > { %v354_v17 = vpop.f32.mrb[0].mxu0 }
 0x1a7   : > { %v355_v18 = vadd.f32 %v354_v17, %v311_v16  ;;  %v500_v19 = vpop.f32.mrb[1].mxu0 }
 0x1a8   : > { %v357_v20 = vpop.f32.mrb[2].mxu0 }
 0x1a9   : > { %360 = vst [vmem:[%s281_s28] sm:$0x3f] %v355_v18  ;;  %v501_v21 = vpop.f32.mrb[3].mxu0 }
 0x1aa PF: > { %s20_s20 = sadd.s32 1, %s683_s20   ;;  %s908_s15 = smov %s667_s16 }
 0x1ab   : > { %p17_p9 = scmp.ge.s32.totalorder %s20_s20, 4   ;;  %s909_s16 = smov %s671_s17 }
 0x1ac   : > { %s910_s17 = smov %s766_s27  ;;  %s911_s18 = smov %s679_s19 }
 0x1ad   : > { %s912_s19 = smov %s914_s22  ;;  %19 = sbr.rel (!%p17_p9) target bundleno = 6 (0x6), region = 89 }
 0x1b4   :  { %386 = vsyncpa [#allocation3], 1 }
 0x1b5   :  { %388 = vsyncpa [#allocation3 + $0x1], 1 }
 0x1b6   :  { %389 = vsyncpa [#allocation5], 1 }
 0x1b7   :  { %391 = vsyncpa [#allocation5 + $0x1], 1 }

</bundles_post_ra>
